<compile_context>
chip_gen: v6e
topology: v6e:2x2x1
jax: 0.10.0
libtpu: 0.0.40
codegen_flags: <defaults>
</compile_context>

<pallas_src>
import jax
import jax.numpy as jnp
from jax.experimental import pallas as pl
from jax.experimental.pallas import tpu as pltpu


# ----------------------------------------------------------------------------- helpers
def _round_up(x: int, m: int) -> int:
    return ((x + m - 1) // m) * m


def _vmem_capacity_bytes() -> int:
    """Physical VMEM per TensorCore (128 MiB v5e/v6e, 64 MiB v7x)."""
    try:
        info = pltpu.get_tpu_info()
        for attr in ("vmem_capacity_bytes", "vmem_size_bytes", "vmem_bytes"):
            v = getattr(info, attr, None)
            if v:
                return int(v)
    except Exception:
        pass
    return 128 * 1024 * 1024  # conservative default (v5e/v6e)


def _choose_batch_tile(B: int, bytes_per_row: int, vmem_avail: int) -> int:
    """Largest batch tile that fits the VMEM budget (cap 512 rows), multiple of
    8 (sublane) / 128 (MXU-friendly), capped at the batch, and split so the
    'parallel' batch axis has >=2 steps for v7x's 2 TensorCores when B is big."""
    tb = min(512, max(8, vmem_avail // max(bytes_per_row, 1)))
    tb = (tb // 128) * 128 if tb >= 128 else (tb // 8) * 8
    b_pad = _round_up(max(B, 1), 8)
    tb = min(max(tb, 8), b_pad)
    if B >= 256 and b_pad <= tb:        # whole batch in one step -> give megacore 2+
        tb = max(128, _round_up(-(-B // 2), 8))
    return tb


def _choose_h_tile(H_p: int) -> int:
    for cand in (512, 384, 256, 128):
        if H_p % cand == 0:
            return cand
    return 128


# ----------------------------------------------------------------------------- kernels
def mlp_resident_kernel(x_ref, w1_ref, b1_ref, w2_ref, b2_ref, o_ref):
    """Both weight matrices resident in VMEM; one batch tile per grid step."""
    # Cast x to bf16 in-kernel (x arrives in its original dtype -> half the HBM
    # traffic vs. writing a bf16 copy from the wrapper).
    x = x_ref[...].astype(w1_ref.dtype)
    # First linear on the MXU, f32 accumulation.
    h = jnp.dot(x, w1_ref[...], preferred_element_type=jnp.float32)
    # Bias + ReLU on the VPU in f32 (v5e has no bf16 VPU datapath).
    h = jnp.maximum(h + b1_ref[...], 0.0)
    # Single downcast right before the second MXU pass.
    h = h.astype(w2_ref.dtype)
    y = jnp.dot(h, w2_ref[...], preferred_element_type=jnp.float32)
    o_ref[...] = (y + b2_ref[...]).astype(o_ref.dtype)


def mlp_h_tiled_kernel(x_ref, w1_ref, b1_ref, w2_ref, b2_ref, o_ref, acc_ref):
    """Fallback when bf16 weights don't fit resident (e.g. v7x 64 MiB VMEM):
    the hidden dim is tiled as a reduction grid axis with an f32 accumulator."""
    h_idx = pl.program_id(1)

    @pl.when(h_idx == 0)
    def _():
        acc_ref[...] = jnp.zeros_like(acc_ref)

    x = x_ref[...].astype(w1_ref.dtype)
    h = jnp.dot(x, w1_ref[...], preferred_element_type=jnp.float32)
    h = jnp.maximum(h + b1_ref[...], 0.0)           # ReLU is elementwise -> per-H-tile OK
    acc_ref[...] += jnp.dot(h.astype(w2_ref.dtype), w2_ref[...],
                            preferred_element_type=jnp.float32)

    @pl.when(h_idx == pl.num_programs(1) - 1)
    def _():
        o_ref[...] = (acc_ref[...] + b2_ref[...]).astype(o_ref.dtype)


# ----------------------------------------------------------------------------- wrappers
def prepare_params(w1, b1, w2, b2):
    """One-time (cache across forward calls) pad + cast of the parameters:
    weights -> bf16 with hidden dim padded to a multiple of 128 (lane-dense
    intermediate), biases -> f32 rows. Zero padding is exact: ReLU(0)=0 and the
    padded W2 rows are zero, so padded hidden columns contribute nothing."""
    in_f, hid = w1.shape
    out_f = w2.shape[1]
    H_p = _round_up(hid, 128)
    w1_p = jnp.zeros((in_f, H_p), jnp.bfloat16).at[:, :hid].set(w1.astype(jnp.bfloat16))
    b1_p = jnp.zeros((1, H_p), jnp.float32).at[:, :hid].set(
        b1.reshape(1, -1).astype(jnp.float32))
    w2_p = jnp.zeros((H_p, out_f), jnp.bfloat16).at[:hid, :].set(w2.astype(jnp.bfloat16))
    b2_p = b2.reshape(1, -1).astype(jnp.float32)
    return w1_p, b1_p, w2_p, b2_p


def _resident_forward(x, w1_p, b1_p, w2_p, b2_p, tb, vmem_limit, single_buffer_weights):
    B, I = x.shape
    H_p = w1_p.shape[1]
    O = w2_p.shape[1]
    # Resident operands never change block index -> single buffer is enough.
    res_kw = {"pipeline_mode": pl.Buffered(1)} if single_buffer_weights else {}
    return pl.pallas_call(
        mlp_resident_kernel,
        out_shape=jax.ShapeDtypeStruct((B, O), x.dtype),
        grid=(pl.cdiv(B, tb),),
        in_specs=[
            pl.BlockSpec((tb, I), lambda i: (i, 0)),               # x: batch-tiled
            pl.BlockSpec((I, H_p), lambda i: (0, 0), **res_kw),    # w1 resident
            pl.BlockSpec((1, H_p), lambda i: (0, 0), **res_kw),    # b1 resident
            pl.BlockSpec((H_p, O), lambda i: (0, 0), **res_kw),    # w2 resident
            pl.BlockSpec((1, O), lambda i: (0, 0), **res_kw),      # b2 resident
        ],
        out_specs=pl.BlockSpec((tb, O), lambda i: (i, 0)),
        compiler_params=pltpu.CompilerParams(
            dimension_semantics=("parallel",),      # batch tiles shard across TCs (v7x)
            vmem_limit_bytes=int(vmem_limit),
        ),
    )(x, w1_p, b1_p, w2_p, b2_p)


def _h_tiled_forward(x, w1_p, b1_p, w2_p, b2_p, tb, th, vmem_limit):
    B, I = x.shape
    H_p = w1_p.shape[1]
    O = w2_p.shape[1]
    return pl.pallas_call(
        mlp_h_tiled_kernel,
        out_shape=jax.ShapeDtypeStruct((B, O), x.dtype),
        grid=(pl.cdiv(B, tb), H_p // th),           # reduction (H) axis last
        in_specs=[
            pl.BlockSpec((tb, I), lambda i, h: (i, 0)),
            pl.BlockSpec((I, th), lambda i, h: (0, h)),
            pl.BlockSpec((1, th), lambda i, h: (0, h)),
            pl.BlockSpec((th, O), lambda i, h: (h, 0)),
            pl.BlockSpec((1, O), lambda i, h: (0, 0)),
        ],
        out_specs=pl.BlockSpec((tb, O), lambda i, h: (i, 0)),
        scratch_shapes=[pltpu.VMEM((tb, O), jnp.float32)],
        compiler_params=pltpu.CompilerParams(
            dimension_semantics=("parallel", "arbitrary"),
            vmem_limit_bytes=int(vmem_limit),
        ),
    )(x, w1_p, b1_p, w2_p, b2_p)


def simple_nn_forward(x, params, *, force_h_tiling=False):
    """Fused MLP forward.  `params` must come from prepare_params() (pad/cast
    is done once there, not per call).  x: (B, in_features) -> (B, out_features)
    in x.dtype.  For a trailing partial batch tile, Pallas masks the OOB output
    rows; rows only interact with themselves, so no re-masking is needed."""
    w1_p, b1_p, w2_p, b2_p = params
    B, I = x.shape
    H_p = w1_p.shape[1]
    O = w2_p.shape[1]
    xsz = jnp.dtype(x.dtype).itemsize
    osz = xsz

    vmem_cap = _vmem_capacity_bytes()
    vmem_limit = int(vmem_cap * 0.75)   # headroom for Mosaic internal scratch (v7x!)

    weight_bytes = (I * H_p + H_p * O) * 2 + (H_p + O) * 4   # single-buffered residents
    use_resident = (not force_h_tiling) and (weight_bytes <= 0.6 * vmem_limit)

    if use_resident:
        # per batch-row: double-buffered x + out tiles, plus f32/bf16 intermediates.
        row_bytes = 2 * I * xsz + 2 * O * osz + 6 * H_p + 4 * O
        tb = _choose_batch_tile(B, row_bytes, vmem_limit - weight_bytes)
        try:
            return _resident_forward(x, w1_p, b1_p, w2_p, b2_p, tb, vmem_limit,
                                     single_buffer_weights=True)
        except Exception:
            # Some runtimes may reject buffer_count=1; default double-buffering
            # only changes the VMEM footprint, not correctness.
            return _resident_forward(x, w1_p, b1_p, w2_p, b2_p, tb, vmem_limit,
                                     single_buffer_weights=False)

    th = _choose_h_tile(H_p)
    fixed_bytes = 2 * ((I * th + th * O) * 2 + th * 4) + O * 4   # double-buffered W tiles
    row_bytes = 2 * I * xsz + 2 * O * osz + 8 * O + 6 * th
    tb = _choose_batch_tile(B, row_bytes, vmem_limit - fixed_bytes)
    return _h_tiled_forward(x, w1_p, b1_p, w2_p, b2_p, tb, th, vmem_limit)


def init_params(key, in_features, hidden_features, out_features, dtype=jnp.float32):
    """PyTorch nn.Linear-style init: U(-1/sqrt(fan_in), 1/sqrt(fan_in))."""
    k1, k2, k3, k4 = jax.random.split(key, 4)
    bound1 = 1.0 / (in_features ** 0.5)
    bound2 = 1.0 / (hidden_features ** 0.5)
    w1 = jax.random.uniform(k1, (in_features, hidden_features), dtype, -bound1, bound1)
    b1 = jax.random.uniform(k2, (1, hidden_features), dtype, -bound1, bound1)
    w2 = jax.random.uniform(k3, (hidden_features, out_features), dtype, -bound2, bound2)
    b2 = jax.random.uniform(k4, (1, out_features), dtype, -bound2, bound2)
    return w1, b1, w2, b2


if __name__ == "__main__":
    batch, in_features, hidden_features, out_features = 8, 32, 64, 16

    key = jax.random.PRNGKey(0)
    kx, kp = jax.random.split(key)
    x = jax.random.normal(kx, (batch, in_features), jnp.float32)
    w1, b1, w2, b2 = init_params(kp, in_features, hidden_features, out_features)

    params = prepare_params(w1, b1, w2, b2)     # one-time pad/cast, reused per call
    out = jax.block_until_ready(simple_nn_forward(x, params))

    # Reference 1: same math with bf16 matmul operands / f32 accumulation.
    xb, w1b, w2b = (a.astype(jnp.bfloat16) for a in (x, w1, w2))
    h_ref = jnp.maximum(
        jnp.dot(xb, w1b, preferred_element_type=jnp.float32) + b1, 0.0
    ).astype(jnp.bfloat16)
    ref_bf16 = jnp.dot(h_ref, w2b, preferred_element_type=jnp.float32) + b2
    # Reference 2: pure f32 (PyTorch-equivalent) — loose tolerance for the bf16 MXU path.
    ref_f32 = jnp.maximum(x @ w1 + b1, 0.0) @ w2 + b2

    assert out.shape == (batch, out_features)
    assert jnp.allclose(out, ref_bf16, atol=1e-3, rtol=1e-3)
    assert jnp.allclose(out, ref_f32, atol=2e-2, rtol=2e-2)

    # Also exercise the H-tiled fallback path (used when the bf16 weights don't
    # fit resident in VMEM, e.g. large layers on v7x) with a multi-step H grid.
    hidden2 = 256
    w1c, b1c, w2c, b2c = init_params(jax.random.PRNGKey(1),
                                     in_features, hidden2, out_features)
    params2 = prepare_params(w1c, b1c, w2c, b2c)
    out2 = jax.block_until_ready(simple_nn_forward(x, params2, force_h_tiling=True))
    ref2_f32 = jnp.maximum(x @ w1c + b1c, 0.0) @ w2c + b2c
    assert out2.shape == (batch, out_features)
    assert jnp.allclose(out2, ref2_f32, atol=2e-2, rtol=2e-2)

    print("KERNEL_OK")
</pallas_src>

<mosaic_0001>
module attributes {stable_mosaic.version = 11 : i64} {
  func.func @mlp_resident_kernel(%arg0: i32, %arg1: memref<8x32xf32, #tpu.memory_space<vmem>>, %arg2: memref<32x128xbf16, #tpu.memory_space<vmem>>, %arg3: memref<1x128xf32, #tpu.memory_space<vmem>>, %arg4: memref<128x16xbf16, #tpu.memory_space<vmem>>, %arg5: memref<1x16xf32, #tpu.memory_space<vmem>>, %arg6: memref<8x16xf32, #tpu.memory_space<vmem>>) attributes {dimension_semantics = [#tpu.dimension_semantics<parallel>], iteration_bounds = array<i64: 1>, scalar_prefetch = 0 : i64, scratch_operands = 0 : i64, tpu.core_type = #tpu.core_type<tc>, window_params = [{transform_indices = @transform_0, window_bounds = array<i64: 8, 32>}, {pipeline_mode = #tpu.pipeline_mode<synchronous>, transform_indices = @transform_1, window_bounds = array<i64: 32, 128>}, {pipeline_mode = #tpu.pipeline_mode<synchronous>, transform_indices = @transform_2, window_bounds = array<i64: 1, 128>}, {pipeline_mode = #tpu.pipeline_mode<synchronous>, transform_indices = @transform_3, window_bounds = array<i64: 128, 16>}, {pipeline_mode = #tpu.pipeline_mode<synchronous>, transform_indices = @transform_4, window_bounds = array<i64: 1, 16>}, {transform_indices = @transform_5, window_bounds = array<i64: 8, 16>}]} {
    %c0 = arith.constant 0 : index
    %c0_0 = arith.constant 0 : index
    %0 = vector.load %arg1[%c0, %c0_0] : memref<8x32xf32, #tpu.memory_space<vmem>>, vector<8x32xf32>
    %1 = arith.truncf %0 : vector<8x32xf32> to vector<8x32xbf16>
    %c0_1 = arith.constant 0 : index
    %c0_2 = arith.constant 0 : index
    %2 = vector.load %arg2[%c0_1, %c0_2] : memref<32x128xbf16, #tpu.memory_space<vmem>>, vector<32x128xbf16>
    %cst = arith.constant dense<0.000000e+00> : vector<8x128xf32>
    %3 = tpu.matmul %1, %2, %cst {dimension_numbers = #tpu.dot_dimension_numbers<[1], [0], [0], [1], [0, 0, 1, 1], [], []>} : vector<8x32xbf16>, vector<32x128xbf16>, vector<8x128xf32> -> vector<8x128xf32>
    %c0_3 = arith.constant 0 : index
    %c0_4 = arith.constant 0 : index
    %4 = vector.load %arg3[%c0_3, %c0_4] : memref<1x128xf32, #tpu.memory_space<vmem>>, vector<1x128xf32>
    %5 = vector.broadcast %4 : vector<1x128xf32> to vector<8x128xf32>
    %6 = arith.addf %3, %5 : vector<8x128xf32>
    %cst_5 = arith.constant 0.000000e+00 : f32
    %7 = vector.broadcast %cst_5 : f32 to vector<8x128xf32>
    %8 = arith.maximumf %6, %7 : vector<8x128xf32>
    %9 = arith.truncf %8 : vector<8x128xf32> to vector<8x128xbf16>
    %c0_6 = arith.constant 0 : index
    %c0_7 = arith.constant 0 : index
    %10 = vector.load %arg4[%c0_6, %c0_7] : memref<128x16xbf16, #tpu.memory_space<vmem>>, vector<128x16xbf16>
    %cst_8 = arith.constant dense<0.000000e+00> : vector<8x16xf32>
    %11 = tpu.matmul %9, %10, %cst_8 {dimension_numbers = #tpu.dot_dimension_numbers<[1], [0], [0], [1], [0, 0, 1, 1], [], []>} : vector<8x128xbf16>, vector<128x16xbf16>, vector<8x16xf32> -> vector<8x16xf32>
    %c0_9 = arith.constant 0 : index
    %c0_10 = arith.constant 0 : index
    %12 = vector.load %arg5[%c0_9, %c0_10] : memref<1x16xf32, #tpu.memory_space<vmem>>, vector<1x16xf32>
    %13 = vector.broadcast %12 : vector<1x16xf32> to vector<8x16xf32>
    %14 = arith.addf %11, %13 : vector<8x16xf32>
    %c0_11 = arith.constant 0 : index
    %c0_12 = arith.constant 0 : index
    %15 = vector.load %arg6[%c0_11, %c0_12] : memref<8x16xf32, #tpu.memory_space<vmem>>, vector<8x16xf32>
    tpu.vector_store %arg6[%c0_11, %c0_12], %14 {strides = array<i32>} : memref<8x16xf32, #tpu.memory_space<vmem>>, vector<8x16xf32>,
    return
  }
  func.func @transform_0(%arg0: i32) -> (i32, i32) {
    %c0_i32 = arith.constant 0 : i32
    %c0_i32_0 = arith.constant 0 : i32
    return %arg0, %c0_i32 : i32, i32
  }
  func.func @transform_1(%arg0: i32) -> (i32, i32) {
    %c0_i32 = arith.constant 0 : i32
    %c0_i32_0 = arith.constant 0 : i32
    %c0_i32_1 = arith.constant 0 : i32
    return %c0_i32, %c0_i32_0 : i32, i32
  }
  func.func @transform_2(%arg0: i32) -> (i32, i32) {
    %c0_i32 = arith.constant 0 : i32
    %c0_i32_0 = arith.constant 0 : i32
    %c0_i32_1 = arith.constant 0 : i32
    return %c0_i32, %c0_i32_0 : i32, i32
  }
  func.func @transform_3(%arg0: i32) -> (i32, i32) {
    %c0_i32 = arith.constant 0 : i32
    %c0_i32_0 = arith.constant 0 : i32
    %c0_i32_1 = arith.constant 0 : i32
    return %c0_i32, %c0_i32_0 : i32, i32
  }
  func.func @transform_4(%arg0: i32) -> (i32, i32) {
    %c0_i32 = arith.constant 0 : i32
    %c0_i32_0 = arith.constant 0 : i32
    %c0_i32_1 = arith.constant 0 : i32
    return %c0_i32, %c0_i32_0 : i32, i32
  }
  func.func @transform_5(%arg0: i32) -> (i32, i32) {
    %c0_i32 = arith.constant 0 : i32
    %c0_i32_0 = arith.constant 0 : i32
    return %arg0, %c0_i32 : i32, i32
  }
}

module attributes {stable_mosaic.version = 11 : i64} {
  func.func @mlp_resident_kernel(%arg0: i32, %arg1: memref<8x32xf32, #tpu.memory_space<vmem>>, %arg2: memref<32x128xbf16, #tpu.memory_space<vmem>>, %arg3: memref<1x128xf32, #tpu.memory_space<vmem>>, %arg4: memref<128x16xbf16, #tpu.memory_space<vmem>>, %arg5: memref<1x16xf32, #tpu.memory_space<vmem>>, %arg6: memref<8x16xf32, #tpu.memory_space<vmem>>) attributes {dimension_semantics = [#tpu.dimension_semantics<parallel>], iteration_bounds = array<i64: 1>, scalar_prefetch = 0 : i64, scratch_operands = 0 : i64, tpu.core_type = #tpu.core_type<tc>, window_params = [{transform_indices = @transform_0, window_bounds = array<i64: 8, 32>}, {pipeline_mode = #tpu.pipeline_mode<synchronous>, transform_indices = @transform_1, window_bounds = array<i64: 32, 128>}, {pipeline_mode = #tpu.pipeline_mode<synchronous>, transform_indices = @transform_2, window_bounds = array<i64: 1, 128>}, {pipeline_mode = #tpu.pipeline_mode<synchronous>, transform_indices = @transform_3, window_bounds = array<i64: 128, 16>}, {pipeline_mode = #tpu.pipeline_mode<synchronous>, transform_indices = @transform_4, window_bounds = array<i64: 1, 16>}, {transform_indices = @transform_5, window_bounds = array<i64: 8, 16>}]} {
    %c0 = arith.constant 0 : index
    %c0_0 = arith.constant 0 : index
    %0 = vector.load %arg1[%c0, %c0_0] : memref<8x32xf32, #tpu.memory_space<vmem>>, vector<8x32xf32>
    %1 = arith.truncf %0 : vector<8x32xf32> to vector<8x32xbf16>
    %c0_1 = arith.constant 0 : index
    %c0_2 = arith.constant 0 : index
    %2 = vector.load %arg2[%c0_1, %c0_2] : memref<32x128xbf16, #tpu.memory_space<vmem>>, vector<32x128xbf16>
    %cst = arith.constant dense<0.000000e+00> : vector<8x128xf32>
    %3 = tpu.matmul %1, %2, %cst {dimension_numbers = #tpu.dot_dimension_numbers<[1], [0], [0], [1], [0, 0, 1, 1], [], []>} : vector<8x32xbf16>, vector<32x128xbf16>, vector<8x128xf32> -> vector<8x128xf32>
    %c0_3 = arith.constant 0 : index
    %c0_4 = arith.constant 0 : index
    %4 = vector.load %arg3[%c0_3, %c0_4] : memref<1x128xf32, #tpu.memory_space<vmem>>, vector<1x128xf32>
    %5 = vector.broadcast %4 : vector<1x128xf32> to vector<8x128xf32>
    %6 = arith.addf %3, %5 : vector<8x128xf32>
    %cst_5 = arith.constant 0.000000e+00 : f32
    %7 = vector.broadcast %cst_5 : f32 to vector<8x128xf32>
    %8 = arith.maximumf %6, %7 : vector<8x128xf32>
    %9 = arith.truncf %8 : vector<8x128xf32> to vector<8x128xbf16>
    %c0_6 = arith.constant 0 : index
    %c0_7 = arith.constant 0 : index
    %10 = vector.load %arg4[%c0_6, %c0_7] : memref<128x16xbf16, #tpu.memory_space<vmem>>, vector<128x16xbf16>
    %cst_8 = arith.constant dense<0.000000e+00> : vector<8x16xf32>
    %11 = tpu.matmul %9, %10, %cst_8 {dimension_numbers = #tpu.dot_dimension_numbers<[1], [0], [0], [1], [0, 0, 1, 1], [], []>} : vector<8x128xbf16>, vector<128x16xbf16>, vector<8x16xf32> -> vector<8x16xf32>
    %c0_9 = arith.constant 0 : index
    %c0_10 = arith.constant 0 : index
    %12 = vector.load %arg5[%c0_9, %c0_10] : memref<1x16xf32, #tpu.memory_space<vmem>>, vector<1x16xf32>
    %13 = vector.broadcast %12 : vector<1x16xf32> to vector<8x16xf32>
    %14 = arith.addf %11, %13 : vector<8x16xf32>
    %c0_11 = arith.constant 0 : index
    %c0_12 = arith.constant 0 : index
    %15 = vector.load %arg6[%c0_11, %c0_12] : memref<8x16xf32, #tpu.memory_space<vmem>>, vector<8x16xf32>
    tpu.vector_store %arg6[%c0_11, %c0_12], %14 {strides = array<i32>} : memref<8x16xf32, #tpu.memory_space<vmem>>, vector<8x16xf32>,
    return
  }
  func.func @transform_0(%arg0: i32) -> (i32, i32) {
    %c0_i32 = arith.constant 0 : i32
    %c0_i32_0 = arith.constant 0 : i32
    return %arg0, %c0_i32 : i32, i32
  }
  func.func @transform_1(%arg0: i32) -> (i32, i32) {
    %c0_i32 = arith.constant 0 : i32
    %c0_i32_0 = arith.constant 0 : i32
    %c0_i32_1 = arith.constant 0 : i32
    return %c0_i32, %c0_i32_0 : i32, i32
  }
  func.func @transform_2(%arg0: i32) -> (i32, i32) {
    %c0_i32 = arith.constant 0 : i32
    %c0_i32_0 = arith.constant 0 : i32
    %c0_i32_1 = arith.constant 0 : i32
    return %c0_i32, %c0_i32_0 : i32, i32
  }
  func.func @transform_3(%arg0: i32) -> (i32, i32) {
    %c0_i32 = arith.constant 0 : i32
    %c0_i32_0 = arith.constant 0 : i32
    %c0_i32_1 = arith.constant 0 : i32
    return %c0_i32, %c0_i32_0 : i32, i32
  }
  func.func @transform_4(%arg0: i32) -> (i32, i32) {
    %c0_i32 = arith.constant 0 : i32
    %c0_i32_0 = arith.constant 0 : i32
    %c0_i32_1 = arith.constant 0 : i32
    return %c0_i32, %c0_i32_0 : i32, i32
  }
  func.func @transform_5(%arg0: i32) -> (i32, i32) {
    %c0_i32 = arith.constant 0 : i32
    %c0_i32_0 = arith.constant 0 : i32
    return %arg0, %c0_i32 : i32, i32
  }
}

</mosaic_0001>

<bundles_post_ra>
// kernel: tpu_custom_call.1
= control target key start
LH: loop header
LB: loop body
LE: loop exit
PB: predicated region body
PF: predicated region fallthrough
CT: control target
= control target key end

     0   :  { %v308_v1 = vmov 0.0   ;;  %vm309_vm0 = vmmov 0   ;;  %vm47_vm1 = vcmask 261120   ;;  %s383_s0 = inlined_call_operand.vmem [shape: f32[8,32], index: 0, kind: input, shape index: {}]   ;;  %s384_s1 = inlined_call_operand.vmem [shape: bf16[32,128], index: 1, kind: input, shape index: {}]   ;;  %s385_s2 = inlined_call_operand.vmem [shape: f32[1,128], index: 2, kind: input, shape index: {}]   ;;  %s386_s3 = inlined_call_operand.vmem [shape: bf16[128,16], index: 3, kind: input, shape index: {}]   ;;  %s387_s4 = inlined_call_operand.vmem [shape: f32[1,16], index: 4, kind: input, shape index: {}]   ;;  %s388_s5 = inlined_call_operand.hbm [shape: f32[8,16], index: 5, kind: output, shape index: {}]  }
   0x1   :  { %v276_v0 = vld [vmem:[%s384_s1 + $0x8] sm:$0xff]   ;;  %245 = vmatprep.subr.bf16.mxu0 %v308_v1  ;;  %v277_v2 = vld [vmem:[%s384_s1] sm:$0xff]   ;;  %253 = vmatprep.subr.bf16.mxu1 %v308_v1  ;;  %v278_v4 = vld [vmem:[%s386_s3 + $0x38] sm:$0xff]  }
   0x2   :  { %246 = vmatpush3.bf16.msra.mxu0 %v276_v0  ;;  %249 = vmatprep.mubr.msk.bf16.mxu0 %vm309_vm0, %v308_v1  ;;  %v22_v3 = vld [vmem:[%s383_s0] sm:$0xff]  ;;  %v279_v6 = vld [vmem:[%s386_s3 + $0x30] sm:$0xff]   ;;  %v280_v7 = vld [vmem:[%s386_s3 + $0x28] sm:$0xff]  }
   0x3   :  { %247 = vmatprep.subr.bf16.mxu0 %v308_v1  ;;  %269 = vmatprep.mubr.msk.bf16.mxu1 %vm309_vm0, %v308_v1  ;;  %v23_v5 = vpack.c.bf16 %v22_v3, %v22_v3 }
   0x4   :  { %254 = vmatpush3.bf16.msra.mxu1 %v278_v4 }
   0x5   :  { %255 = vmatprep.subr.bf16.mxu1 %v308_v1 }
   0x6   :  { %248 = vmatpush3.bf16.msra.mxu0 %v277_v2 }
   0x8   :  { %256 = vmatpush3.bf16.msra.mxu1 %v279_v6 }
   0x9   :  { %250 = vmatmul.mubr.msk.bf16.vlgmr.msra.gmra.mxu0 %vm47_vm1, %v23_v5  ;;  %257 = vmatprep.subr.bf16.mxu1 %v308_v1 }
   0xa   :  { %10 = vsyncpa [#allocation3], 0  ;;  %v281_v8 = vld [vmem:[%s386_s3 + $0x20] sm:$0xff]   ;;  %v282_v9 = vld [vmem:[%s386_s3 + $0x18] sm:$0xff]   ;;  %s310_s17 = smov [#allocation2]   ;;  %vm204_vm2 = vcmask 130048  }
   0xb   :  { %v283_v10 = vld [vmem:[%s386_s3 + $0x10] sm:$0xff]   ;;  %v284_v11 = vld [vmem:[%s386_s3 + $0x8] sm:$0xff]   ;;  %v285_v12 = vld [vmem:[%s386_s3] sm:$0xff]   ;;  %s212_s18 = sshll.u32 %s310_s17, 4  ;;  %s213_s18 = int_to_ptr.vmem [resolvable:$true] %s212_s18 }
   0xc   :  { %258 = vmatpush3.bf16.msra.mxu1 %v280_v7  ;;  %v220_v13 = vld [vmem:[%s385_s2] ss:$0 sm:$0xff]  ;;  %s286_s2 = scalar_lea.vmem %s213_s18, 128  ;;  %p291_p1 = scmp.lt.s32.totalorder %s213_s18, %s213_s18 }
   0xd   :  { %259 = vmatprep.subr.bf16.mxu1 %v308_v1  ;;  %v224_v21 = vld [vmem:[%s387_s4] ss:$0 sm:$0xff]  ;;  %p287_p0 = scmp.ne.s32.totalorder %s213_s18, %s286_s2  ;;  %p292_p2 = scmp.lt.s32.totalorder %s286_s2, %s286_s2 }
   0xf   :  { %p293_p3 = por %p292_p2, %p291_p1 }
  0x10   :  { %260 = vmatpush3.bf16.msra.mxu1 %v281_v8 }
  0x11   :  { %261 = vmatprep.subr.bf16.mxu1 %v308_v1  ;;  %p294_p4 = pnand %p293_p3, %p287_p0 }
  0x14   :  { %262 = vmatpush3.bf16.msra.mxu1 %v282_v9 }
  0x15   :  { %263 = vmatprep.subr.bf16.mxu1 %v308_v1 }
  0x18   :  { %264 = vmatpush3.bf16.msra.mxu1 %v283_v10 }
  0x19   :  { %265 = vmatprep.subr.bf16.mxu1 %v308_v1 }
  0x1c   :  { %266 = vmatpush3.bf16.msra.mxu1 %v284_v11 }
  0x1d   :  { %267 = vmatprep.subr.bf16.mxu1 %v308_v1 }
  0x20   :  { %268 = vmatpush3.bf16.msra.mxu1 %v285_v12 }
  0xc9   :  { %v85_v14 = vpop.f32.mrf.mxu0 }
  0xca   :  { %v86_v15 = vadd.f32 %v220_v13, %v85_v14 }
  0xcb   :  { %v251_v16 = vpop.f32.mrf.mxu0 }
  0xcc   :  { %v91_v17 = vmax.f32 %v86_v15, 0.0 }
  0xcd   :  { %v88_v18 = vpop.f32.mrf.mxu0 }
  0xce   :  { %v92_v19 = vpack.c.bf16 %v91_v17, %v91_v17 }
  0xcf   :  { %v252_v20 = vpop.f32.mrf.mxu0 }
  0xd0   :  { %270 = vmatmul.mubr.bf16.vlgmr.msra.gmra.mxu1 %v92_v19 }
 0x190   :  { %v198_v22 = vpop.f32.mrf.mxu1 }
 0x191   :  { %v199_v23 = vadd.f32 %v224_v21, %v198_v22 }
 0x192   :  { %v271_v24 = vpop.f32.mrf.mxu1 }
 0x193   :  { %205 = vst.msk [vmem:[#allocation2] sm:$0xff] %vm204_vm2, %v199_v23 }
 0x194   :  { %v201_v25 = vpop.f32.mrf.mxu1 }
 0x195   :  { %297 = shalt.err (!%p294_p4)
}
 0x196   :  { %215 = dma.vmem_to_hbm [thread:$0]  %s213_s18, 128, %s388_s5, [#allocation3]   ;;  %v272_v26 = vpop.f32.mrf.mxu1 }
 0x197   :  { %306 = dma.done.wait [#allocation3], 128  }
 0x198   :  { %307 = vsyncadd [#allocation3], 4294967168 }
 0x199   :  { %219 = vsyncpa [#allocation3], 1 }

// kernel: tpu_custom_call.1
= control target key start
LH: loop header
LB: loop body
LE: loop exit
PB: predicated region body
PF: predicated region fallthrough
CT: control target
= control target key end

     0   :  { %v308_v1 = vmov 0.0   ;;  %vm309_vm0 = vmmov 0   ;;  %vm47_vm1 = vcmask 261120   ;;  %s383_s0 = inlined_call_operand.vmem [shape: f32[8,32], index: 0, kind: input, shape index: {}]   ;;  %s384_s1 = inlined_call_operand.vmem [shape: bf16[32,128], index: 1, kind: input, shape index: {}]   ;;  %s385_s2 = inlined_call_operand.vmem [shape: f32[1,128], index: 2, kind: input, shape index: {}]   ;;  %s386_s3 = inlined_call_operand.vmem [shape: bf16[128,16], index: 3, kind: input, shape index: {}]   ;;  %s387_s4 = inlined_call_operand.vmem [shape: f32[1,16], index: 4, kind: input, shape index: {}]   ;;  %s388_s5 = inlined_call_operand.hbm [shape: f32[8,16], index: 5, kind: output, shape index: {}]  }
   0x1   :  { %v276_v0 = vld [vmem:[%s384_s1 + $0x8] sm:$0xff]   ;;  %245 = vmatprep.subr.bf16.mxu0 %v308_v1  ;;  %v277_v2 = vld [vmem:[%s384_s1] sm:$0xff]   ;;  %253 = vmatprep.subr.bf16.mxu1 %v308_v1  ;;  %v278_v4 = vld [vmem:[%s386_s3 + $0x38] sm:$0xff]  }
   0x2   :  { %246 = vmatpush3.bf16.msra.mxu0 %v276_v0  ;;  %249 = vmatprep.mubr.msk.bf16.mxu0 %vm309_vm0, %v308_v1  ;;  %v22_v3 = vld [vmem:[%s383_s0] sm:$0xff]  ;;  %v279_v6 = vld [vmem:[%s386_s3 + $0x30] sm:$0xff]   ;;  %v280_v7 = vld [vmem:[%s386_s3 + $0x28] sm:$0xff]  }
   0x3   :  { %247 = vmatprep.subr.bf16.mxu0 %v308_v1  ;;  %269 = vmatprep.mubr.msk.bf16.mxu1 %vm309_vm0, %v308_v1  ;;  %v23_v5 = vpack.c.bf16 %v22_v3, %v22_v3 }
   0x4   :  { %254 = vmatpush3.bf16.msra.mxu1 %v278_v4 }
   0x5   :  { %255 = vmatprep.subr.bf16.mxu1 %v308_v1 }
   0x6   :  { %248 = vmatpush3.bf16.msra.mxu0 %v277_v2 }
   0x8   :  { %256 = vmatpush3.bf16.msra.mxu1 %v279_v6 }
   0x9   :  { %250 = vmatmul.mubr.msk.bf16.vlgmr.msra.gmra.mxu0 %vm47_vm1, %v23_v5  ;;  %257 = vmatprep.subr.bf16.mxu1 %v308_v1 }
   0xa   :  { %10 = vsyncpa [#allocation3], 0  ;;  %v281_v8 = vld [vmem:[%s386_s3 + $0x20] sm:$0xff]   ;;  %v282_v9 = vld [vmem:[%s386_s3 + $0x18] sm:$0xff]   ;;  %s310_s17 = smov [#allocation2]   ;;  %vm204_vm2 = vcmask 130048  }
   0xb   :  { %v283_v10 = vld [vmem:[%s386_s3 + $0x10] sm:$0xff]   ;;  %v284_v11 = vld [vmem:[%s386_s3 + $0x8] sm:$0xff]   ;;  %v285_v12 = vld [vmem:[%s386_s3] sm:$0xff]   ;;  %s212_s18 = sshll.u32 %s310_s17, 4  ;;  %s213_s18 = int_to_ptr.vmem [resolvable:$true] %s212_s18 }
   0xc   :  { %258 = vmatpush3.bf16.msra.mxu1 %v280_v7  ;;  %v220_v13 = vld [vmem:[%s385_s2] ss:$0 sm:$0xff]  ;;  %s286_s2 = scalar_lea.vmem %s213_s18, 128  ;;  %p291_p1 = scmp.lt.s32.totalorder %s213_s18, %s213_s18 }
   0xd   :  { %259 = vmatprep.subr.bf16.mxu1 %v308_v1  ;;  %v224_v21 = vld [vmem:[%s387_s4] ss:$0 sm:$0xff]  ;;  %p287_p0 = scmp.ne.s32.totalorder %s213_s18, %s286_s2  ;;  %p292_p2 = scmp.lt.s32.totalorder %s286_s2, %s286_s2 }
   0xf   :  { %p293_p3 = por %p292_p2, %p291_p1 }
  0x10   :  { %260 = vmatpush3.bf16.msra.mxu1 %v281_v8 }
  0x11   :  { %261 = vmatprep.subr.bf16.mxu1 %v308_v1  ;;  %p294_p4 = pnand %p293_p3, %p287_p0 }
  0x14   :  { %262 = vmatpush3.bf16.msra.mxu1 %v282_v9 }
  0x15   :  { %263 = vmatprep.subr.bf16.mxu1 %v308_v1 }
  0x18   :  { %264 = vmatpush3.bf16.msra.mxu1 %v283_v10 }
  0x19   :  { %265 = vmatprep.subr.bf16.mxu1 %v308_v1 }
  0x1c   :  { %266 = vmatpush3.bf16.msra.mxu1 %v284_v11 }
  0x1d   :  { %267 = vmatprep.subr.bf16.mxu1 %v308_v1 }
  0x20   :  { %268 = vmatpush3.bf16.msra.mxu1 %v285_v12 }
  0xc9   :  { %v85_v14 = vpop.f32.mrf.mxu0 }
  0xca   :  { %v86_v15 = vadd.f32 %v220_v13, %v85_v14 }
  0xcb   :  { %v251_v16 = vpop.f32.mrf.mxu0 }
  0xcc   :  { %v91_v17 = vmax.f32 %v86_v15, 0.0 }
  0xcd   :  { %v88_v18 = vpop.f32.mrf.mxu0 }
  0xce   :  { %v92_v19 = vpack.c.bf16 %v91_v17, %v91_v17 }
  0xcf   :  { %v252_v20 = vpop.f32.mrf.mxu0 }
  0xd0   :  { %270 = vmatmul.mubr.bf16.vlgmr.msra.gmra.mxu1 %v92_v19 }
 0x190   :  { %v198_v22 = vpop.f32.mrf.mxu1 }
 0x191   :  { %v199_v23 = vadd.f32 %v224_v21, %v198_v22 }
 0x192   :  { %v271_v24 = vpop.f32.mrf.mxu1 }
 0x193   :  { %205 = vst.msk [vmem:[#allocation2] sm:$0xff] %vm204_vm2, %v199_v23 }
 0x194   :  { %v201_v25 = vpop.f32.mrf.mxu1 }
 0x195   :  { %297 = shalt.err (!%p294_p4)
}
 0x196   :  { %215 = dma.vmem_to_hbm [thread:$0]  %s213_s18, 128, %s388_s5, [#allocation3]   ;;  %v272_v26 = vpop.f32.mrf.mxu1 }
 0x197   :  { %306 = dma.done.wait [#allocation3], 128  }
 0x198   :  { %307 = vsyncadd [#allocation3], 4294967168 }
 0x199   :  { %219 = vsyncpa [#allocation3], 1 }

</bundles_post_ra>
